<compile_context>
chip_gen: v7x
topology: tpu7x:2x2x1
jax: 0.10.0
libtpu: 0.0.40
codegen_flags: <defaults>
</compile_context>

<pallas_src>
import jax
import jax.numpy as jnp
from jax.experimental import pallas as pl
from jax.experimental.pallas import tpu as pltpu


def _transition_kernel(x_ref, w_ref, b_ref, o_ref):
    # x_ref: (tR, 2, Wh, 2*Cin) bf16 -- tR window-row-pairs; lanes = (w-parity, Cin)
    # w_ref: (2*Cin, Cout_pad)  bf16 -- 0.25 * BN-scale folded weight, duplicated per w-parity
    # b_ref: (1, Cout_pad)      f32  -- BN bias pushed through the 1x1 conv
    # o_ref: (tR*Wh, Cout_pad)  f32
    x = x_ref[...]
    s = x[:, 0] + x[:, 1]                       # sum over the two window rows (non-tiled axis)
    t_r, w_h, k2 = s.shape
    s2 = s.reshape(t_r * w_h, k2)               # flatten output pixels onto the sublane axis
    # Duplicated weight sums the two window columns inside the f32 MXU accumulator.
    y = jnp.dot(s2, w_ref[...], preferred_element_type=jnp.float32)
    o_ref[...] = (y + b_ref[...]).astype(o_ref.dtype)


def _pick_block_rows(num_rows, w_half, target_m=512):
    """Largest-sense divisor of num_rows whose flattened pixel count is ~target_m
    and a multiple of 8 (lane/sublane-friendly output block)."""
    best_d, best_gap = num_rows, None
    for d in range(1, num_rows + 1):
        if num_rows % d:
            continue
        if (d * w_half) % 8 and d != num_rows:
            continue
        gap = abs(d * w_half - target_m)
        if best_gap is None or gap < best_gap:
            best_d, best_gap = d, gap
    return best_d


def transition_forward(x_nchw, gamma, beta, running_mean, running_var, conv_w,
                       eps: float = 1e-5):
    """Forward of Transition. x_nchw: (N, Cin, H, W); conv_w: (Cout, Cin, 1, 1). Returns NCHW."""
    N, Cin, H, W = x_nchw.shape
    Cout = conv_w.shape[0]
    assert H % 2 == 0 and W % 2 == 0, "AvgPool2d(2, 2) path assumes even H and W"
    Hh, Wh = H // 2, W // 2
    R = N * Hh                       # window-row-pairs across the whole batch
    M = R * Wh                       # total output pixels
    Cout_pad = max(128, -(-Cout // 128) * 128)   # lane-dense output stores

    # ---- glue: single NCHW -> NHWC pass, fused with the bf16 downcast by XLA ----
    x = jnp.transpose(x_nchw, (0, 2, 3, 1)).astype(jnp.bfloat16)
    x = x.reshape(R, 2, Wh, 2 * Cin)             # free reshape of contiguous NHWC

    # ---- fold BN (eval) + 1/4 pool factor into the (tiny) 1x1-conv weight ----
    inv_std = 1.0 / jnp.sqrt(running_var.astype(jnp.float32) + eps)
    scale = gamma.astype(jnp.float32) * inv_std                          # (Cin,)
    bias = beta.astype(jnp.float32) - running_mean.astype(jnp.float32) * scale
    w = conv_w.reshape(Cout, Cin).astype(jnp.float32)                    # (Cout, Cin)
    w_cf = (0.25 * w * scale[None, :]).T                                 # (Cin, Cout)
    w2 = jnp.concatenate([w_cf, w_cf], axis=0)                           # (2*Cin, Cout)
    w2 = jnp.pad(w2, ((0, 0), (0, Cout_pad - Cout))).astype(jnp.bfloat16)
    bias_row = jnp.pad(w @ bias, (0, Cout_pad - Cout)).reshape(1, Cout_pad)  # f32

    block_rows = _pick_block_rows(R, Wh)
    grid = (R // block_rows,)

    cost = pl.CostEstimate(
        flops=2 * M * (2 * Cin) * Cout_pad,
        transcendentals=0,
        bytes_accessed=int(x.size) * 2 + M * Cout_pad * 4
                       + int(w2.size) * 2 + Cout_pad * 4,
    )

    out2d = pl.pallas_call(
        _transition_kernel,
        out_shape=jax.ShapeDtypeStruct((M, Cout_pad), jnp.float32),
        grid_spec=pltpu.PrefetchScalarGridSpec(
            num_scalar_prefetch=0,
            grid=grid,
            in_specs=[
                pl.BlockSpec((block_rows, 2, Wh, 2 * Cin), lambda i: (i, 0, 0, 0)),
                pl.BlockSpec((2 * Cin, Cout_pad), lambda i: (0, 0)),
                pl.BlockSpec((1, Cout_pad), lambda i: (0, 0)),
            ],
            out_specs=pl.BlockSpec((block_rows * Wh, Cout_pad), lambda i: (i, 0)),
        ),
        compiler_params=pltpu.CompilerParams(
            dimension_semantics=("parallel",)),
        cost_estimate=cost,
    )(x, w2, bias_row)

    # ---- glue: (M, Cout_pad) -> NCHW (N, Cout, Hh, Wh); slice fuses into the transpose ----
    out = out2d.reshape(N, Hh, Wh, Cout_pad)[..., :Cout]
    return jnp.transpose(out, (0, 3, 1, 2))


def _reference_forward(x_nchw, gamma, beta, running_mean, running_var, conv_w,
                       eps: float = 1e-5):
    """Pure-JAX f32 reference: BN(eval) -> 1x1 conv -> AvgPool(2,2), NCHW."""
    N, Cin, H, W = x_nchw.shape
    Cout = conv_w.shape[0]
    xn = (x_nchw - running_mean[None, :, None, None]) / jnp.sqrt(
        running_var[None, :, None, None] + eps)
    xn = gamma[None, :, None, None] * xn + beta[None, :, None, None]
    y = jnp.einsum('nchw,oc->nohw', xn, conv_w.reshape(Cout, Cin))
    y = y.reshape(N, Cout, H // 2, 2, W // 2, 2).mean(axis=(3, 5))
    return y


if __name__ == "__main__":
    N, Cin, Cout, H, W = 2, 4, 2, 16, 16

    key = jax.random.PRNGKey(0)
    kx, kg, kb, km, kv, kw = jax.random.split(key, 6)

    x = jax.random.normal(kx, (N, Cin, H, W), dtype=jnp.float32)
    gamma = jax.random.normal(kg, (Cin,), dtype=jnp.float32) * 0.1 + 1.0
    beta = jax.random.normal(kb, (Cin,), dtype=jnp.float32) * 0.1
    running_mean = jax.random.normal(km, (Cin,), dtype=jnp.float32) * 0.1
    running_var = jax.random.uniform(kv, (Cin,), dtype=jnp.float32,
                                     minval=0.5, maxval=1.5)
    conv_w = jax.random.normal(kw, (Cout, Cin, 1, 1), dtype=jnp.float32) * 0.5

    out = transition_forward(x, gamma, beta, running_mean, running_var, conv_w)
    out = jax.block_until_ready(out)

    ref = _reference_forward(x, gamma, beta, running_mean, running_var, conv_w)
    assert out.shape == (N, Cout, H // 2, W // 2), out.shape
    # bf16 activations/weights with f32 accumulation: check relative L2 error.
    rel_err = jnp.sqrt(jnp.sum((out - ref) ** 2) / jnp.sum(ref ** 2))
    assert rel_err < 2e-2, f"relative L2 error {rel_err}"

    print("KERNEL_OK")
</pallas_src>

<mosaic_0001>
module attributes {stable_mosaic.version = 11 : i64} {
  func.func @_transition_kernel(%arg0: i32, %arg1: memref<16x2x8x8xbf16, #tpu.memory_space<vmem>>, %arg2: memref<8x128xbf16, #tpu.memory_space<vmem>>, %arg3: memref<1x128xf32, #tpu.memory_space<vmem>>, %arg4: memref<128x128xf32, #tpu.memory_space<vmem>>) attributes {dimension_semantics = [#tpu.dimension_semantics<parallel>], iteration_bounds = array<i64: 1>, scalar_prefetch = 0 : i64, scratch_operands = 0 : i64, tpu.core_type = #tpu.core_type<tc>, window_params = [{transform_indices = @transform_0, window_bounds = array<i64: 16, 2, 8, 8>}, {pipeline_mode = #tpu.pipeline_mode<synchronous>, transform_indices = @transform_1, window_bounds = array<i64: 8, 128>}, {pipeline_mode = #tpu.pipeline_mode<synchronous>, transform_indices = @transform_2, window_bounds = array<i64: 1, 128>}, {transform_indices = @transform_3, window_bounds = array<i64: 128, 128>}]} {
    %c0 = arith.constant 0 : index
    %c0_0 = arith.constant 0 : index
    %c0_1 = arith.constant 0 : index
    %c0_2 = arith.constant 0 : index
    %0 = vector.load %arg1[%c0, %c0_0, %c0_1, %c0_2] : memref<16x2x8x8xbf16, #tpu.memory_space<vmem>>, vector<16x2x8x8xbf16>
    %1 = vector.extract_strided_slice %0 {offsets = [0, 0, 0, 0], sizes = [16, 1, 8, 8], strides = [1, 1, 1, 1]} : vector<16x2x8x8xbf16> to vector<16x1x8x8xbf16>
    %2 = vector.shape_cast %1 : vector<16x1x8x8xbf16> to vector<16x8x8xbf16>
    %3 = vector.extract_strided_slice %0 {offsets = [0, 1, 0, 0], sizes = [16, 1, 8, 8], strides = [1, 1, 1, 1]} : vector<16x2x8x8xbf16> to vector<16x1x8x8xbf16>
    %4 = vector.shape_cast %3 : vector<16x1x8x8xbf16> to vector<16x8x8xbf16>
    %5 = arith.addf %2, %4 : vector<16x8x8xbf16>
    %6 = vector.shape_cast %5 : vector<16x8x8xbf16> to vector<128x8xbf16>
    %c0_3 = arith.constant 0 : index
    %c0_4 = arith.constant 0 : index
    %7 = vector.load %arg2[%c0_3, %c0_4] : memref<8x128xbf16, #tpu.memory_space<vmem>>, vector<8x128xbf16>
    %cst = arith.constant dense<0.000000e+00> : vector<128x128xf32>
    %8 = tpu.matmul %6, %7, %cst {dimension_numbers = #tpu.dot_dimension_numbers<[1], [0], [0], [1], [0, 0, 1, 1], [], []>} : vector<128x8xbf16>, vector<8x128xbf16>, vector<128x128xf32> -> vector<128x128xf32>
    %c0_5 = arith.constant 0 : index
    %c0_6 = arith.constant 0 : index
    %9 = vector.load %arg3[%c0_5, %c0_6] : memref<1x128xf32, #tpu.memory_space<vmem>>, vector<1x128xf32>
    %10 = vector.broadcast %9 : vector<1x128xf32> to vector<128x128xf32>
    %11 = arith.addf %8, %10 : vector<128x128xf32>
    %c0_7 = arith.constant 0 : index
    %c0_8 = arith.constant 0 : index
    %12 = vector.load %arg4[%c0_7, %c0_8] : memref<128x128xf32, #tpu.memory_space<vmem>>, vector<128x128xf32>
    tpu.vector_store %arg4[%c0_7, %c0_8], %11 {strides = array<i32>} : memref<128x128xf32, #tpu.memory_space<vmem>>, vector<128x128xf32>,
    return
  }
  func.func @transform_0(%arg0: i32) -> (i32, i32, i32, i32) {
    %c0_i32 = arith.constant 0 : i32
    %c0_i32_0 = arith.constant 0 : i32
    %c0_i32_1 = arith.constant 0 : i32
    %c0_i32_2 = arith.constant 0 : i32
    return %arg0, %c0_i32, %c0_i32_0, %c0_i32_1 : i32, i32, i32, i32
  }
  func.func @transform_1(%arg0: i32) -> (i32, i32) {
    %c0_i32 = arith.constant 0 : i32
    %c0_i32_0 = arith.constant 0 : i32
    %c0_i32_1 = arith.constant 0 : i32
    return %c0_i32, %c0_i32_0 : i32, i32
  }
  func.func @transform_2(%arg0: i32) -> (i32, i32) {
    %c0_i32 = arith.constant 0 : i32
    %c0_i32_0 = arith.constant 0 : i32
    %c0_i32_1 = arith.constant 0 : i32
    return %c0_i32, %c0_i32_0 : i32, i32
  }
  func.func @transform_3(%arg0: i32) -> (i32, i32) {
    %c0_i32 = arith.constant 0 : i32
    %c0_i32_0 = arith.constant 0 : i32
    return %arg0, %c0_i32 : i32, i32
  }
}

</mosaic_0001>

<bundles_post_ra>
// kernel: tpu_custom_call.1
= control target key start
LH: loop header
LB: loop body
LE: loop exit
PB: predicated region body
PF: predicated region fallthrough
CT: control target
= control target key end

     0   :  { %vm137_vm0 = vcmask 1043456   ;;  %vm112_vm1 = vcmask 64512   ;;  %s490_s0 = inlined_call_operand.vmem [shape: bf16[16,2,8,8], index: 0, kind: input, shape index: {}]   ;;  %s491_s1 = inlined_call_operand.vmem [shape: bf16[8,128], index: 1, kind: input, shape index: {}]   ;;  %s492_s2 = inlined_call_operand.vmem [shape: f32[1,128], index: 2, kind: input, shape index: {}]   ;;  %s493_s3 = inlined_call_operand.hbm [shape: f32[128,128], index: 3, kind: output, shape index: {}]  }
   0x1   :  { %v64_v0 = vld [vmem:[%s491_s1] sm:$0xf]  ;;  %v17_v3 = vld [vmem:[%s490_s0 + $0x4] sm:$0xf]  ;;  %v18_v4 = vld [vmem:[%s490_s0 + $0x8] sm:$0xf] }
   0x2   :  { %v16_v1 = vld [vmem:[%s490_s0] sm:$0xf]  ;;  %316 = vmatprep.subr.msk.bf16.mxu0 %vm137_vm0, %v64_v0  ;;  %317 = vmatprep.subr.msk.bf16.mxu1 %vm137_vm0, %v64_v0  ;;  %v139_v2 = vsel %vm137_vm0, %v64_v0, 0  ;;  %v19_v5 = vld [vmem:[%s490_s0 + $0xc] sm:$0xf] }
   0x3   :  { %297 = vmatpush3.bf16.msra.mxu0 %v139_v2  ;;  %315 = vmatpush3.bf16.msra.mxu1 %v139_v2  ;;  %v48_v6 = vadd.bf16 %v17_v3, %v16_v1  ;;  %v32_v7 = vld [vmem:[%s490_s0 + $0x40] sm:$0xf]  ;;  %v33_v8 = vld [vmem:[%s490_s0 + $0x44] sm:$0xf]  ;;  %v49_v9 = vadd.bf16 %v19_v5, %v18_v4  ;;  %v34_v10 = vld [vmem:[%s490_s0 + $0x48] sm:$0xf] }
   0x4   :  { %v35_v11 = vld [vmem:[%s490_s0 + $0x4c] sm:$0xf]  ;;  %v56_v12 = vadd.bf16 %v33_v8, %v32_v7  ;;  %v20_v13 = vld [vmem:[%s490_s0 + $0x10] sm:$0xf]  ;;  %v21_v15 = vld [vmem:[%s490_s0 + $0x14] sm:$0xf] }
   0x5   :  { %v57_v14 = vadd.bf16 %v35_v11, %v34_v10  ;;  %v22_v16 = vld [vmem:[%s490_s0 + $0x18] sm:$0xf]  ;;  %v23_v17 = vld [vmem:[%s490_s0 + $0x1c] sm:$0xf]  ;;  %v271_v18 = vcombine.low %v48_v6, %v49_v9  ;;  %v50_v19 = vadd.bf16 %v21_v15, %v20_v13  ;;  %v36_v21 = vld [vmem:[%s490_s0 + $0x50] sm:$0xf] }
   0x6   :  { %v51_v20 = vadd.bf16 %v23_v17, %v22_v16  ;;  %v37_v22 = vld [vmem:[%s490_s0 + $0x54] sm:$0xf]  ;;  %v38_v23 = vld [vmem:[%s490_s0 + $0x58] sm:$0xf]  ;;  %v39_v25 = vld [vmem:[%s490_s0 + $0x5c] sm:$0xf] }
   0x7   :  { %v275_v24 = vcombine.low %v56_v12, %v57_v14  ;;  %v58_v26 = vadd.bf16 %v37_v22, %v36_v21  ;;  %v24_v27 = vld [vmem:[%s490_s0 + $0x20] sm:$0xf]  ;;  %v25_v28 = vld [vmem:[%s490_s0 + $0x24] sm:$0xf]  ;;  %298 = vmatprep.mubr.msk.bf16.mxu0 %vm112_vm1, %v271_v18  ;;  %v59_v30 = vadd.bf16 %v39_v25, %v38_v23  ;;  %v26_v31 = vld [vmem:[%s490_s0 + $0x28] sm:$0xf] }
   0x8   :  { %v272_v29 = vcombine.low %v50_v19, %v51_v20  ;;  %v27_v32 = vld [vmem:[%s490_s0 + $0x2c] sm:$0xf]  ;;  %v52_v33 = vadd.bf16 %v25_v28, %v24_v27  ;;  %v40_v34 = vld [vmem:[%s490_s0 + $0x60] sm:$0xf]  ;;  %v41_v36 = vld [vmem:[%s490_s0 + $0x64] sm:$0xf] }
   0x9   :  { %306 = vmatprep.mubr.msk.bf16.mxu1 %vm112_vm1, %v275_v24  ;;  %v53_v35 = vadd.bf16 %v27_v32, %v26_v31  ;;  %v42_v37 = vld [vmem:[%s490_s0 + $0x68] sm:$0xf]  ;;  %v43_v38 = vld [vmem:[%s490_s0 + $0x6c] sm:$0xf]  ;;  %v276_v39 = vcombine.low %v58_v26, %v59_v30  ;;  %v60_v40 = vadd.bf16 %v41_v36, %v40_v34  ;;  %v28_v42 = vld [vmem:[%s490_s0 + $0x30] sm:$0xf] }
   0xa   :  { %299 = vmatmul.mubr.msk.bf16.vlgmr.msra.gmra.mrb[0].mxu0 %vm112_vm1, %v272_v29  ;;  %v61_v41 = vadd.bf16 %v43_v38, %v42_v37  ;;  %v29_v43 = vld [vmem:[%s490_s0 + $0x34] sm:$0xf]  ;;  %v30_v44 = vld [vmem:[%s490_s0 + $0x38] sm:$0xf]  ;;  %v31_v46 = vld [vmem:[%s490_s0 + $0x3c] sm:$0xf] }
   0xb   :  { %v273_v45 = vcombine.low %v52_v33, %v53_v35  ;;  %v54_v47 = vadd.bf16 %v29_v43, %v28_v42  ;;  %v44_v48 = vld [vmem:[%s490_s0 + $0x70] sm:$0xf]  ;;  %v45_v49 = vld [vmem:[%s490_s0 + $0x74] sm:$0xf]  ;;  %307 = vmatmul.mubr.msk.bf16.vlgmr.msra.gmra.mrb[0].mxu1 %vm112_vm1, %v276_v39  ;;  %v55_v51 = vadd.bf16 %v31_v46, %v30_v44  ;;  %v46_v52 = vld [vmem:[%s490_s0 + $0x78] sm:$0xf] }
   0xc   :  { %v277_v50 = vcombine.low %v60_v40, %v61_v41  ;;  %v47_v53 = vld [vmem:[%s490_s0 + $0x7c] sm:$0xf]  ;;  %v62_v54 = vadd.bf16 %v45_v49, %v44_v48 }
   0xd   :  { %8 = vsyncpa [#allocation3], 0  ;;  %302 = vmatprep.mubr.msk.bf16.mxu0 %vm112_vm1, %v273_v45  ;;  %v63_v55 = vadd.bf16 %v47_v53, %v46_v52  ;;  %v274_v56 = vcombine.low %v54_v47, %v55_v51  ;;  %v270_v58 = vld [vmem:[%s492_s2] ss:$0 sm:$0xff]  ;;  %s345_s0 = smov [#allocation2]  }
   0xe   :  { %310 = vmatprep.mubr.msk.bf16.mxu1 %vm112_vm1, %v277_v50  ;;  %s259_s2 = sshll.u32 %s345_s0, 4  ;;  %s260_s2 = int_to_ptr.vmem [resolvable:$true] %s259_s2 }
   0xf   :  { %v278_v57 = vcombine.low %v62_v54, %v63_v55  ;;  %s321_s23 = scalar_lea.vmem %s260_s2, 2048  ;;  %p326_p1 = scmp.lt.s32.totalorder %s260_s2, %s260_s2 }
  0x10   :  { %p322_p0 = scmp.ne.s32.totalorder %s260_s2, %s321_s23  ;;  %p327_p2 = scmp.lt.s32.totalorder %s321_s23, %s321_s23 }
  0x12   :  { %303 = vmatmul.mubr.msk.bf16.gmra.mrb[4].mxu0 %vm112_vm1, %v274_v56  ;;  %p328_p3 = por %p327_p2, %p326_p1 }
  0x13   :  { %311 = vmatmul.mubr.msk.bf16.gmra.mrb[4].mxu1 %vm112_vm1, %v278_v57 }
  0x14   :  { %p329_p4 = pnand %p328_p3, %p322_p0 }
  0xdd   :  { %v300_v59 = vpop.f32.mrb[0].mxu0 }
  0xde   :  { %v184_v60 = vadd.f32 %v300_v59, %v270_v58  ;;  %v175_v61 = vpop.f32.mrb[1].mxu0  ;;  %v308_v62 = vpop.f32.mrb[0].mxu1 }
  0xdf   :  { %v176_v63 = vadd.f32 %v270_v58, %v175_v61  ;;  %v301_v0 = vpop.f32.mrb[2].mxu0  ;;  %v216_v1 = vadd.f32 %v308_v62, %v270_v58  ;;  %v207_v2 = vpop.f32.mrb[1].mxu1 }
  0xe0   :  { %240 = vst [vmem:[#allocation2 + $0x10] sm:$0xff] %v184_v60  ;;  %v187_v3 = vadd.f32 %v301_v0, %v270_v58  ;;  %v178_v4 = vpop.f32.mrb[3].mxu0  ;;  %v208_v5 = vadd.f32 %v270_v58, %v207_v2  ;;  %v309_v6 = vpop.f32.mrb[2].mxu1 }
  0xe1   :  { %238 = vst [vmem:[#allocation2] sm:$0xff] %v176_v63  ;;  %v179_v7 = vadd.f32 %v270_v58, %v178_v4  ;;  %248 = vst [vmem:[#allocation2 + $0x50] sm:$0xff] %v216_v1  ;;  %v219_v8 = vadd.f32 %v309_v6, %v270_v58  ;;  %v210_v9 = vpop.f32.mrb[3].mxu1 }
  0xe2   :  { %241 = vst [vmem:[#allocation2 + $0x18] sm:$0xff] %v187_v3  ;;  %246 = vst [vmem:[#allocation2 + $0x40] sm:$0xff] %v208_v5  ;;  %v211_v10 = vadd.f32 %v270_v58, %v210_v9 }
  0xe3   :  { %239 = vst [vmem:[#allocation2 + $0x8] sm:$0xff] %v179_v7  ;;  %249 = vst [vmem:[#allocation2 + $0x58] sm:$0xff] %v219_v8 }
  0xe4   :  { %247 = vst [vmem:[#allocation2 + $0x48] sm:$0xff] %v211_v10 }
  0xe5   :  { %v304_v11 = vpop.f32.mrb[4].mxu0 }
  0xe6   :  { %v200_v12 = vadd.f32 %v304_v11, %v270_v58  ;;  %v191_v13 = vpop.f32.mrb[5].mxu0  ;;  %v312_v14 = vpop.f32.mrb[4].mxu1 }
  0xe7   :  { %v192_v15 = vadd.f32 %v270_v58, %v191_v13  ;;  %v305_v16 = vpop.f32.mrb[6].mxu0  ;;  %v232_v17 = vadd.f32 %v312_v14, %v270_v58  ;;  %v223_v18 = vpop.f32.mrb[5].mxu1 }
  0xe8   :  { %244 = vst [vmem:[#allocation2 + $0x30] sm:$0xff] %v200_v12  ;;  %v203_v19 = vadd.f32 %v305_v16, %v270_v58  ;;  %v194_v20 = vpop.f32.mrb[7].mxu0  ;;  %v224_v21 = vadd.f32 %v270_v58, %v223_v18  ;;  %v313_v22 = vpop.f32.mrb[6].mxu1 }
  0xe9   :  { %242 = vst [vmem:[#allocation2 + $0x20] sm:$0xff] %v192_v15  ;;  %v195_v23 = vadd.f32 %v270_v58, %v194_v20  ;;  %252 = vst [vmem:[#allocation2 + $0x70] sm:$0xff] %v232_v17  ;;  %v235_v24 = vadd.f32 %v313_v22, %v270_v58  ;;  %v226_v25 = vpop.f32.mrb[7].mxu1 }
  0xea   :  { %245 = vst [vmem:[#allocation2 + $0x38] sm:$0xff] %v203_v19  ;;  %250 = vst [vmem:[#allocation2 + $0x60] sm:$0xff] %v224_v21  ;;  %v227_v26 = vadd.f32 %v270_v58, %v226_v25 }
  0xeb   :  { %243 = vst [vmem:[#allocation2 + $0x28] sm:$0xff] %v195_v23  ;;  %253 = vst [vmem:[#allocation2 + $0x78] sm:$0xff] %v235_v24 }
  0xec   :  { %251 = vst [vmem:[#allocation2 + $0x68] sm:$0xff] %v227_v26 }
  0xed   :  { %332 = shalt.err (!%p329_p4)
}
  0xee   :  { %s333_s26 = scalar_lea.hbm %s493_s3, 2048 }
  0xef   :  { %p334_p5 = scmp.ne.s32.totalorder %s493_s3, %s333_s26  ;;  %p337_p6 = scmp.lt.u32.totalorder %s333_s26, %s493_s3 }
  0xf1   :  { %p339_p7 = pnand %p337_p6, %p334_p5 }
  0xf3   :  { %342 = shalt.err (!%p339_p7)
}
  0xf4   :  { %s346_s4 = smov 128   ;;  %s347_s5 = smov 8  }
  0xf5   :  { %265 = dma.vmem_to_hbm [thread:$0]  %s260_s2, 2048, %s493_s3, [#allocation3], %s346_s4, %s346_s4, %s347_s5  }
  0xf6   :  { %343 = dma.done.wait [#allocation3], 2048  }
  0xf7   :  { %344 = vsyncadd [#allocation3], 4294965248 }
  0xf8   :  { %269 = vsyncpa [#allocation3], 1 }

</bundles_post_ra>
